<compile_context>
chip_gen: v7x
topology: tpu7x:2x2x1
jax: 0.10.0
libtpu: 0.0.40
codegen_flags: <defaults>
</compile_context>

<pallas_src>
import math

import jax
import jax.numpy as jnp
from jax.experimental import pallas as pl
from jax.experimental.pallas import tpu as pltpu


# ----------------------------------------------------------------------------
# plain-JAX glue
# ----------------------------------------------------------------------------
def timestep_embedding(timesteps, dim, max_period=10000.0):
    half = dim // 2
    freqs = jnp.exp(-math.log(max_period)
                    * jnp.arange(half, dtype=jnp.float32) / half)
    args = timesteps.astype(jnp.float32)[:, None] * freqs[None, :]
    emb = jnp.concatenate([jnp.cos(args), jnp.sin(args)], axis=-1)
    if dim % 2 == 1:
        emb = jnp.pad(emb, ((0, 0), (0, 1)))
    return emb                             # [B, dim] f32


# ----------------------------------------------------------------------------
# Kernel 1: per-batch conditioning bias (CFG fold + masked context pool)
# ----------------------------------------------------------------------------
def _cond_kernel(drop_ref, clen_ref,                     # SMEM int32[B] each
                 temb_ref, ctx_ref, emb_ref, wt_ref, wc_ref,
                 bias_ref):
    b = pl.program_id(0)

    # timestep conditioning: silu(t_emb @ W_t), f32 accumulation
    t = jax.nn.silu(
        jnp.dot(temb_ref[0].astype(jnp.bfloat16), wt_ref[...],
                preferred_element_type=jnp.float32))               # (1, D)

    # masked mean-pool over T; mask generated in-kernel from the length scalar
    T = ctx_ref.shape[1]
    pos = jax.lax.broadcasted_iota(jnp.int32, (T, 1), 0)
    cm = (pos < clen_ref[b]).astype(jnp.float32)                   # (T, 1)
    ctx = ctx_ref[0].astype(jnp.float32)                           # (T, C)
    csum = jnp.sum(ctx * cm, axis=0, keepdims=True)                # (1, C)
    cnt = jnp.maximum(jnp.sum(cm, axis=0, keepdims=True), 1.0)
    cmean = csum / cnt

    # CFG token drop, folded algebraically: a dropped row's masked mean is
    # exactly the cfg embedding, so blend on the tiny (1, C) vector.
    d = (drop_ref[b] != 0).astype(jnp.float32)
    cvec = cmean + d * (emb_ref[...].astype(jnp.float32) - cmean)

    cpool = jnp.dot(cvec.astype(jnp.bfloat16), wc_ref[...],
                    preferred_element_type=jnp.float32)            # (1, D)
    bias_ref[0] = t + cpool


# ----------------------------------------------------------------------------
# Kernel 2: backbone x-path (two D x D projections + SiLU + length mask)
# ----------------------------------------------------------------------------
def _backbone_kernel(xlen_ref,                           # SMEM int32[B]
                     x_ref, bias_ref, wx_ref, wo_ref,
                     out_ref):
    b = pl.program_id(0)
    lt = pl.program_id(1)
    Lt = x_ref.shape[1]

    x = x_ref[0].astype(jnp.bfloat16)                              # cast in-kernel
    h = jnp.dot(x, wx_ref[...], preferred_element_type=jnp.float32)
    h = h + bias_ref[0]                                            # (Lt,D)+(1,D)
    # TODO(synk): on v5e (no bf16 EUP) prefer f32 silu; bf16 halves EUP work on v6e/v7x.
    h = jax.nn.silu(h.astype(jnp.bfloat16))
    out = jnp.dot(h, wo_ref[...], preferred_element_type=jnp.float32)

    # x-mask regenerated in-kernel from the per-batch length (no dense mask DMA)
    row = lt * Lt + jax.lax.broadcasted_iota(jnp.int32, (Lt, 1), 0)
    out_ref[0] = jnp.where(row < xlen_ref[b], out, 0.0).astype(out_ref.dtype)


# ----------------------------------------------------------------------------
# wrapper
# ----------------------------------------------------------------------------
def cfg_backbone_pallas(params, x, timesteps, context,
                        x_mask, context_mask, drop,
                        l_tile=1024, out_dtype=jnp.bfloat16):
    """Fused CFG drop + synthetic backbone forward.  `drop` is int32[B] 0/1."""
    B, L, D = x.shape
    _, T, C = context.shape

    # masks -> per-batch lengths (SMEM scalars).
    # TODO(synk): assumes standard prefix padding masks; arbitrary boolean
    # masks would need a (cheap, bf16/int8) tensor path instead.
    x_len = (jnp.full((B,), L, jnp.int32) if x_mask is None
             else jnp.sum(x_mask.astype(jnp.int32), axis=1))
    c_len = (jnp.full((B,), T, jnp.int32) if context_mask is None
             else jnp.sum(context_mask.astype(jnp.int32), axis=1))
    drop = drop.astype(jnp.int32)

    temb3 = timestep_embedding(timesteps, D).reshape(B, 1, D)        # f32
    emb2 = params["cfg_embedding"].reshape(1, C).astype(jnp.float32)
    wt = params["w_t"].astype(jnp.bfloat16)
    wc = params["w_c"].astype(jnp.bfloat16)
    wx = params["w_x"].astype(jnp.bfloat16)
    wo = params["w_o"].astype(jnp.bfloat16)

    # ---- kernel 1: per-batch conditioning bias [B, 1, D] f32 -----------------
    bias = pl.pallas_call(
        _cond_kernel,
        out_shape=jax.ShapeDtypeStruct((B, 1, D), jnp.float32),
        grid_spec=pltpu.PrefetchScalarGridSpec(
            num_scalar_prefetch=2,               # drop flags + context lengths
            grid=(B,),
            in_specs=[
                pl.BlockSpec((1, 1, D), lambda b, *_: (b, 0, 0)),    # t_emb
                pl.BlockSpec((1, T, C), lambda b, *_: (b, 0, 0)),    # context
                pl.BlockSpec((1, C),    lambda b, *_: (0, 0)),       # cfg emb
                pl.BlockSpec((D, D),    lambda b, *_: (0, 0)),       # w_t
                pl.BlockSpec((C, D),    lambda b, *_: (0, 0)),       # w_c
            ],
            out_specs=pl.BlockSpec((1, 1, D), lambda b, *_: (b, 0, 0)),
        ),
        compiler_params=pltpu.CompilerParams(
            dimension_semantics=("parallel",)),
    )(drop, c_len, temb3, context, emb2, wt, wc)

    # ---- tile / pad L ---------------------------------------------------------
    l_tile = max(8, (int(l_tile) // 8) * 8)
    if L <= l_tile:
        l_tile_eff = L                   # single full-extent block (always legal)
        L_pad = L
    else:
        l_tile_eff = l_tile
        L_pad = ((L + l_tile - 1) // l_tile) * l_tile
    x_in = x if L_pad == L else jnp.pad(x, ((0, 0), (0, L_pad - L), (0, 0)))
    n_lt = L_pad // l_tile_eff

    out_itemsize = jnp.dtype(out_dtype).itemsize
    cost = pl.CostEstimate(
        flops=4 * B * L_pad * D * D,                     # two MXU matmuls
        transcendentals=B * L_pad * D,                   # one sigmoid per elem
        bytes_accessed=(B * L_pad * D * x.dtype.itemsize # x
                        + B * D * 4                      # bias
                        + 2 * D * D * 2                  # wx, wo (bf16)
                        + B * L_pad * D * out_itemsize), # out
    )

    # ---- kernel 2: main x-path ------------------------------------------------
    out = pl.pallas_call(
        _backbone_kernel,
        out_shape=jax.ShapeDtypeStruct((B, L_pad, D), out_dtype),
        grid_spec=pltpu.PrefetchScalarGridSpec(
            num_scalar_prefetch=1,                       # x lengths -> SMEM
            grid=(B, n_lt),
            in_specs=[
                pl.BlockSpec((1, l_tile_eff, D), lambda b, lt, *_: (b, lt, 0)),
                pl.BlockSpec((1, 1, D),          lambda b, lt, *_: (b, 0, 0)),
                pl.BlockSpec((D, D),             lambda b, lt, *_: (0, 0)),
                pl.BlockSpec((D, D),             lambda b, lt, *_: (0, 0)),
            ],
            out_specs=pl.BlockSpec((1, l_tile_eff, D),
                                   lambda b, lt, *_: (b, lt, 0)),
        ),
        compiler_params=pltpu.CompilerParams(
            # No cross-tile scratch state -> both axes parallel (v7x dual-TC
            # can shard either axis; single-TC chips are unaffected).
            dimension_semantics=("parallel", "parallel"),
            # footprint is small (< 8 MiB even at l_tile=4096); 48 MiB leaves
            # headroom on v7x's 64 MiB VMEM.
            vmem_limit_bytes=48 * 1024 * 1024,
        ),
        cost_estimate=cost,
    )(x_len, x_in, bias, wx, wo)

    return out if L_pad == L else out[:, :L]


# ----------------------------------------------------------------------------
# CFGModel API
# ----------------------------------------------------------------------------
def init_cfg_model_params(key, context_dim, model_dim):
    k_emb, k_t, k_c, k_x, k_o = jax.random.split(key, 5)
    return {
        # EmbeddingCFG: randn(C) / C**0.5
        "cfg_embedding": jax.random.normal(k_emb, (context_dim,), jnp.float32)
                         / math.sqrt(context_dim),
        # synthetic backbone weights
        "w_t": jax.random.normal(k_t, (model_dim, model_dim), jnp.float32)
               / math.sqrt(model_dim),
        "w_c": jax.random.normal(k_c, (context_dim, model_dim), jnp.float32)
               / math.sqrt(context_dim),
        "w_x": jax.random.normal(k_x, (model_dim, model_dim), jnp.float32)
               / math.sqrt(model_dim),
        "w_o": jax.random.normal(k_o, (model_dim, model_dim), jnp.float32)
               / math.sqrt(model_dim),
    }


def cfg_model_forward(params, x, timesteps, context,
                      x_mask=None, context_mask=None,
                      cfg_prob=0.0, drop_key=None, l_tile=1024):
    B = x.shape[0]
    if cfg_prob > 0.0 and drop_key is not None:
        drop = (jax.random.uniform(drop_key, (B,)) < cfg_prob).astype(jnp.int32)
    else:
        drop = jnp.zeros((B,), jnp.int32)
    return cfg_backbone_pallas(params, x, timesteps, context,
                               x_mask, context_mask, drop, l_tile=l_tile)


# ----------------------------------------------------------------------------
# pure-JAX reference (matching precision choices) for a correctness check
# ----------------------------------------------------------------------------
def _reference_forward(params, x, timesteps, context, x_len, c_len, drop,
                       out_dtype=jnp.bfloat16):
    B, L, D = x.shape
    _, T, C = context.shape
    wt = params["w_t"].astype(jnp.bfloat16)
    wc = params["w_c"].astype(jnp.bfloat16)
    wx = params["w_x"].astype(jnp.bfloat16)
    wo = params["w_o"].astype(jnp.bfloat16)
    emb = params["cfg_embedding"].astype(jnp.float32)

    temb = timestep_embedding(timesteps, D).astype(jnp.bfloat16)
    t = jax.nn.silu(jnp.dot(temb, wt, preferred_element_type=jnp.float32))

    cm = (jnp.arange(T)[None, :] < c_len[:, None]).astype(jnp.float32)
    ctx = context.astype(jnp.float32)
    csum = jnp.sum(ctx * cm[:, :, None], axis=1)
    cnt = jnp.maximum(jnp.sum(cm, axis=1, keepdims=True), 1.0)
    cmean = csum / cnt
    d = (drop > 0).astype(jnp.float32)[:, None]
    cvec = cmean + d * (emb[None, :] - cmean)
    cpool = jnp.dot(cvec.astype(jnp.bfloat16), wc,
                    preferred_element_type=jnp.float32)
    bias = t + cpool

    h = jnp.einsum("bld,de->ble", x.astype(jnp.bfloat16), wx,
                   preferred_element_type=jnp.float32)
    h = jax.nn.silu((h + bias[:, None, :]).astype(jnp.bfloat16))
    out = jnp.einsum("bld,de->ble", h, wo, preferred_element_type=jnp.float32)
    xm = (jnp.arange(L)[None, :] < x_len[:, None]).astype(jnp.float32)
    return (out * xm[:, :, None]).astype(out_dtype)


# ----------------------------------------------------------------------------
if __name__ == "__main__":
    key = jax.random.PRNGKey(0)
    k_par, k_x, k_t, k_ctx, k_drop = jax.random.split(key, 5)

    # lane-dense feature dims; L chosen not a multiple of the tile to exercise
    # the padding path and a multi-tile grid
    B, L, D = 2, 320, 128
    T, C = 8, 128

    params = init_cfg_model_params(k_par, context_dim=C, model_dim=D)

    x = jax.random.normal(k_x, (B, L, D), jnp.float32)
    timesteps = jax.random.uniform(k_t, (B,), jnp.float32) * 1000.0
    context = jax.random.normal(k_ctx, (B, T, C), jnp.float32)

    x_mask = jnp.arange(L)[None, :] < jnp.array([L, L - 20])[:, None]
    context_mask = jnp.arange(T)[None, :] < jnp.array([T, T - 3])[:, None]

    # deterministic drop flags covering both CFG branches
    drop = jnp.array([1, 0], jnp.int32)

    out = cfg_backbone_pallas(params, x, timesteps, context,
                              x_mask, context_mask, drop, l_tile=128)
    jax.block_until_ready(out)
    assert out.shape == (B, L, D)
    assert out.dtype == jnp.bfloat16

    x_len = jnp.sum(x_mask.astype(jnp.int32), axis=1)
    c_len = jnp.sum(context_mask.astype(jnp.int32), axis=1)
    ref = _reference_forward(params, x, timesteps, context, x_len, c_len, drop)
    assert jnp.allclose(out.astype(jnp.float32), ref.astype(jnp.float32),
                        atol=5e-2, rtol=5e-2)

    # default-tile path + RNG-driven CFG drop (original API shape)
    out2 = cfg_model_forward(params, x, timesteps, context,
                             x_mask=x_mask, context_mask=context_mask,
                             cfg_prob=0.5, drop_key=k_drop)
    jax.block_until_ready(out2)
    assert out2.shape == (B, L, D)

    print("KERNEL_OK")
</pallas_src>

<mosaic_0001>
module attributes {stable_mosaic.version = 11 : i64} {
  func.func @_cond_kernel(%arg0: i32, %arg1: memref<2xi32, #tpu.memory_space<smem>>, %arg2: memref<2xi32, #tpu.memory_space<smem>>, %arg3: memref<1x1x128xf32, #tpu.memory_space<vmem>>, %arg4: memref<1x8x128xf32, #tpu.memory_space<vmem>>, %arg5: memref<1x128xf32, #tpu.memory_space<vmem>>, %arg6: memref<128x128xbf16, #tpu.memory_space<vmem>>, %arg7: memref<128x128xbf16, #tpu.memory_space<vmem>>, %arg8: memref<1x1x128xf32, #tpu.memory_space<vmem>>) attributes {dimension_semantics = [#tpu.dimension_semantics<parallel>], iteration_bounds = array<i64: 2>, scalar_prefetch = 2 : i64, scratch_operands = 0 : i64, tpu.core_type = #tpu.core_type<tc>, window_params = [{transform_indices = @transform_0, window_bounds = array<i64: 1, 1, 128>}, {transform_indices = @transform_1, window_bounds = array<i64: 1, 8, 128>}, {pipeline_mode = #tpu.pipeline_mode<synchronous>, transform_indices = @transform_2, window_bounds = array<i64: 1, 128>}, {pipeline_mode = #tpu.pipeline_mode<synchronous>, transform_indices = @transform_3, window_bounds = array<i64: 128, 128>}, {pipeline_mode = #tpu.pipeline_mode<synchronous>, transform_indices = @transform_4, window_bounds = array<i64: 128, 128>}, {transform_indices = @transform_5, window_bounds = array<i64: 1, 1, 128>}]} {
    %c0 = arith.constant 0 : index
    %c0_0 = arith.constant 0 : index
    %c0_1 = arith.constant 0 : index
    %0 = vector.load %arg3[%c0, %c0_0, %c0_1] : memref<1x1x128xf32, #tpu.memory_space<vmem>>, vector<1x1x128xf32>
    %1 = vector.shape_cast %0 : vector<1x1x128xf32> to vector<1x128xf32>
    %2 = arith.truncf %1 : vector<1x128xf32> to vector<1x128xbf16>
    %c0_2 = arith.constant 0 : index
    %c0_3 = arith.constant 0 : index
    %3 = vector.load %arg6[%c0_2, %c0_3] : memref<128x128xbf16, #tpu.memory_space<vmem>>, vector<128x128xbf16>
    %cst = arith.constant dense<0.000000e+00> : vector<1x128xf32>
    %4 = tpu.matmul %2, %3, %cst {dimension_numbers = #tpu.dot_dimension_numbers<[1], [0], [0], [1], [0, 0, 1, 1], [], []>} : vector<1x128xbf16>, vector<128x128xbf16>, vector<1x128xf32> -> vector<1x128xf32>
    %5 = arith.negf %4 : vector<1x128xf32>
    %6 = math.exp %5 : vector<1x128xf32>
    %cst_4 = arith.constant 1.000000e+00 : f32
    %7 = vector.broadcast %cst_4 : f32 to vector<1x128xf32>
    %8 = arith.addf %7, %6 : vector<1x128xf32>
    %9 = arith.divf %7, %8 : vector<1x128xf32>
    %10 = arith.mulf %4, %9 : vector<1x128xf32>
    %11 = tpu.iota {dimensions = array<i32: 0>} : vector<8x1xi32>
    %12 = arith.index_cast %arg0 : i32 to index
    %13 = memref.load %arg2[%12] : memref<2xi32, #tpu.memory_space<smem>>
    %14 = vector.broadcast %13 : i32 to vector<8x1xi32>
    %15 = arith.cmpi slt, %11, %14 : vector<8x1xi32>
    %16 = arith.extui %15 : vector<8x1xi1> to vector<8x1xi32>
    %17 = arith.sitofp %16 : vector<8x1xi32> to vector<8x1xf32>
    %c0_5 = arith.constant 0 : index
    %c0_6 = arith.constant 0 : index
    %c0_7 = arith.constant 0 : index
    %18 = vector.load %arg4[%c0_5, %c0_6, %c0_7] : memref<1x8x128xf32, #tpu.memory_space<vmem>>, vector<1x8x128xf32>
    %19 = vector.shape_cast %18 : vector<1x8x128xf32> to vector<8x128xf32>
    %20 = vector.broadcast %17 : vector<8x1xf32> to vector<8x128xf32>
    %21 = arith.mulf %19, %20 : vector<8x128xf32>
    %cst_8 = arith.constant dense<0.000000e+00> : vector<128xf32>
    %22 = vector.multi_reduction <add>, %21, %cst_8 [0] : vector<8x128xf32> to vector<128xf32>
    %23 = vector.shape_cast %22 : vector<128xf32> to vector<1x128xf32>
    %cst_9 = arith.constant dense<0.000000e+00> : vector<1xf32>
    %24 = vector.multi_reduction <add>, %17, %cst_9 [0] : vector<8x1xf32> to vector<1xf32>
    %25 = vector.shape_cast %24 : vector<1xf32> to vector<1x1xf32>
    %cst_10 = arith.constant 1.000000e+00 : f32
    %26 = vector.broadcast %cst_10 : f32 to vector<1x1xf32>
    %27 = arith.maximumf %25, %26 : vector<1x1xf32>
    %28 = vector.broadcast %27 : vector<1x1xf32> to vector<1x128xf32>
    %29 = arith.divf %23, %28 : vector<1x128xf32>
    %30 = arith.index_cast %arg0 : i32 to index
    %31 = memref.load %arg1[%30] : memref<2xi32, #tpu.memory_space<smem>>
    %c0_i32 = arith.constant 0 : i32
    %32 = arith.cmpi ne, %31, %c0_i32 : i32
    %33 = arith.extui %32 : i1 to i32
    %34 = arith.sitofp %33 : i32 to f32
    %c0_11 = arith.constant 0 : index
    %c0_12 = arith.constant 0 : index
    %35 = vector.load %arg5[%c0_11, %c0_12] : memref<1x128xf32, #tpu.memory_space<vmem>>, vector<1x128xf32>
    %36 = arith.subf %35, %29 : vector<1x128xf32>
    %37 = vector.broadcast %34 : f32 to vector<1x128xf32>
    %38 = arith.mulf %37, %36 : vector<1x128xf32>
    %39 = arith.addf %29, %38 : vector<1x128xf32>
    %40 = arith.truncf %39 : vector<1x128xf32> to vector<1x128xbf16>
    %c0_13 = arith.constant 0 : index
    %c0_14 = arith.constant 0 : index
    %41 = vector.load %arg7[%c0_13, %c0_14] : memref<128x128xbf16, #tpu.memory_space<vmem>>, vector<128x128xbf16>
    %cst_15 = arith.constant dense<0.000000e+00> : vector<1x128xf32>
    %42 = tpu.matmul %40, %41, %cst_15 {dimension_numbers = #tpu.dot_dimension_numbers<[1], [0], [0], [1], [0, 0, 1, 1], [], []>} : vector<1x128xbf16>, vector<128x128xbf16>, vector<1x128xf32> -> vector<1x128xf32>
    %43 = arith.addf %10, %42 : vector<1x128xf32>
    %c0_16 = arith.constant 0 : index
    %c0_17 = arith.constant 0 : index
    %c0_18 = arith.constant 0 : index
    %44 = vector.load %arg8[%c0_16, %c0_17, %c0_18] : memref<1x1x128xf32, #tpu.memory_space<vmem>>, vector<1x1x128xf32>
    %45 = vector.shape_cast %44 : vector<1x1x128xf32> to vector<1x128xf32>
    %46 = vector.shape_cast %43 : vector<1x128xf32> to vector<1x1x128xf32>
    tpu.vector_store %arg8[%c0_16, %c0_17, %c0_18], %46 {strides = array<i32>} : memref<1x1x128xf32, #tpu.memory_space<vmem>>, vector<1x1x128xf32>,
    return
  }
  func.func @transform_0(%arg0: i32, %arg1: memref<2xi32, #tpu.memory_space<smem>>, %arg2: memref<2xi32, #tpu.memory_space<smem>>) -> (i32, i32, i32) {
    %c0_i32 = arith.constant 0 : i32
    %c0_i32_0 = arith.constant 0 : i32
    %c0_i32_1 = arith.constant 0 : i32
    return %arg0, %c0_i32, %c0_i32_0 : i32, i32, i32
  }
  func.func @transform_1(%arg0: i32, %arg1: memref<2xi32, #tpu.memory_space<smem>>, %arg2: memref<2xi32, #tpu.memory_space<smem>>) -> (i32, i32, i32) {
    %c0_i32 = arith.constant 0 : i32
    %c0_i32_0 = arith.constant 0 : i32
    %c0_i32_1 = arith.constant 0 : i32
    return %arg0, %c0_i32, %c0_i32_0 : i32, i32, i32
  }
  func.func @transform_2(%arg0: i32, %arg1: memref<2xi32, #tpu.memory_space<smem>>, %arg2: memref<2xi32, #tpu.memory_space<smem>>) -> (i32, i32) {
    %c0_i32 = arith.constant 0 : i32
    %c0_i32_0 = arith.constant 0 : i32
    %c0_i32_1 = arith.constant 0 : i32
    return %c0_i32, %c0_i32_0 : i32, i32
  }
  func.func @transform_3(%arg0: i32, %arg1: memref<2xi32, #tpu.memory_space<smem>>, %arg2: memref<2xi32, #tpu.memory_space<smem>>) -> (i32, i32) {
    %c0_i32 = arith.constant 0 : i32
    %c0_i32_0 = arith.constant 0 : i32
    %c0_i32_1 = arith.constant 0 : i32
    return %c0_i32, %c0_i32_0 : i32, i32
  }
  func.func @transform_4(%arg0: i32, %arg1: memref<2xi32, #tpu.memory_space<smem>>, %arg2: memref<2xi32, #tpu.memory_space<smem>>) -> (i32, i32) {
    %c0_i32 = arith.constant 0 : i32
    %c0_i32_0 = arith.constant 0 : i32
    %c0_i32_1 = arith.constant 0 : i32
    return %c0_i32, %c0_i32_0 : i32, i32
  }
  func.func @transform_5(%arg0: i32, %arg1: memref<2xi32, #tpu.memory_space<smem>>, %arg2: memref<2xi32, #tpu.memory_space<smem>>) -> (i32, i32, i32) {
    %c0_i32 = arith.constant 0 : i32
    %c0_i32_0 = arith.constant 0 : i32
    %c0_i32_1 = arith.constant 0 : i32
    return %arg0, %c0_i32, %c0_i32_0 : i32, i32, i32
  }
}

</mosaic_0001>

<bundles_post_ra>
// kernel: tpu_custom_call.1
= control target key start
LH: loop header
LB: loop body
LE: loop exit
PB: predicated region body
PF: predicated region fallthrough
CT: control target
= control target key end

     0   :  { %s1350_s0 = inlined_call_operand.hbm [shape: s32[2], index: 0, kind: input, shape index: {}]   ;;  %s1351_s2 = inlined_call_operand.vmem [shape: f32[2,1,128], index: 2, kind: input, shape index: {}]   ;;  %s1352_s3 = inlined_call_operand.hbm [shape: f32[2,8,128], index: 3, kind: input, shape index: {}]   ;;  %s1353_s4 = inlined_call_operand.vmem [shape: f32[1,128], index: 4, kind: input, shape index: {}]   ;;  %s1354_s5 = inlined_call_operand.hbm [shape: bf16[128,128], index: 5, kind: input, shape index: {}]   ;;  %s1355_s6 = inlined_call_operand.hbm [shape: bf16[128,128], index: 6, kind: input, shape index: {}]   ;;  %s1356_s7 = inlined_call_operand.hbm [shape: f32[2,1,128], index: 7, kind: output, shape index: {}]   ;;  %s1357_s1 = inlined_call_operand.vmem [shape: s32[2], index: 1, kind: input, shape index: {}]  }
   0x1   :  { %s838_s26 = scalar_lea.hbm %s1350_s0, 16 }
   0x2   :  { %p839_p0 = scmp.ne.s32.totalorder %s1350_s0, %s838_s26  ;;  %p842_p1 = scmp.lt.u32.totalorder %s838_s26, %s1350_s0 }
   0x4   :  { %p844_p2 = pnand %p842_p1, %p839_p0 }
   0x6   :  { %847 = shalt.err (!%p844_p2)  }
   0x7   :  { %s1020_s8 = smov [#allocation3]   ;;  %s14_s13 = sshll.u32 %s1357_s1, 4  ;;  %s15_s13 = int_to_ptr.vmem [resolvable:$true] %s14_s13 }
   0x8   :  { %13 = dma.hbm_to_smem %s1350_s0, 16, %s1020_s8, [#allocation2] }
   0x9   :  { %s848_s14 = scalar_lea.vmem %s15_s13, 16  ;;  %p853_p4 = scmp.lt.s32.totalorder %s15_s13, %s15_s13 }
   0xa   :  { %p849_p3 = scmp.ne.s32.totalorder %s15_s13, %s848_s14  ;;  %p854_p5 = scmp.lt.s32.totalorder %s848_s14, %s848_s14 }
   0xc   :  { %p855_p6 = por %p854_p5, %p853_p4 }
   0xe   :  { %p856_p7 = pnand %p855_p6, %p849_p3 }
  0x10   :  { %859 = shalt.err (!%p856_p7)  }
  0x11   :  { %s1021_s15 = smov [#allocation4]  }
  0x12   :  { %17 = dma.vmem_to_smem %s15_s13, 16, %s1021_s15, [#allocation2] }
  0x13   :  { %990 = dma.done.wait [#allocation2], 32 }
  0x14   :  { %991 = vsyncadd [#allocation2], 4294967264 }
  0x15   :  { %19 = sfence }
  0x16   :  { %20 = vsyncpa [#allocation6], 0 }
  0x17   :  { %22 = vsyncpa [#allocation6 + $0x1], 0 }
  0x18   :  { %23 = vsyncpa [#allocation9], 0 }
  0x19   :  { %24 = vsyncpa [#allocation7], 0 }
  0x1a   :  { %26 = vsyncpa [#allocation7 + $0x1], 0  ;;  %s1085_s0 = smov 0   ;;  %s1087_s1 = smov 0  }
  0x1b   :  { %s1089_s16 = smov 0   ;;  %s1091_s17 = smov 0  }
  0x1c LB: > { %s1106_s18 = sadd.s32 4294967295, %s1018_s17   ;;  %s653_s19 = sadd.s32 4294967294, %s1018_s17   ;;  %s1018_s17 = sphi %s1091_s17, %s1377_s17   ;;  %s1014_s16 = sphi %s1089_s16, %s1376_s16   ;;  %s1010_s1 = sphi %s1087_s1, %s1375_s1   ;;  %s1006_s0 = sphi %s1085_s0, %s1374_s0  }
  0x1d   : > { %p78_p8 = scmp.ne.s32.totalorder %s1010_s1, %s1006_s0  ;;  %p1358_p9 = scmp.eq.s32.totalorder %s1106_s18, 0 }
  0x1e   : > { %p171_p11 = scmp.eq.s32.totalorder %s653_s19, 1  ;;  %p654_p13 = scmp.ge.s32.totalorder %s1018_s17, 1 }
  0x1f   : > { %p1115_p12 = por %p1358_p9, %p78_p8  ;;  %p178_p1 = scmp.lt.s32.totalorder %s1018_s17, 3 }
  0x20   : > { %p1120_p0 = por %p171_p11, %p78_p8  ;;  %s1022_s23 = smov [#allocation8]  }
  0x21   : > { %s1361_s20 = scalar_select %p1115_p12, 1, 0 }
  0x22   : > { %s1362_s21 = scalar_select %p1120_p0, 1, 0 }
  0x23   : > { %p1125_p2 = pnand %p654_p13, %p178_p1  ;;  %s193_s24 = sshll.u32 %s1022_s23, 4  ;;  %s1129_s24 = int_to_ptr.vmem [resolvable:$true] %s193_s24 }
  0x24   : > { %s1023_s26 = smov [#allocation10]   ;;  %s860_s30 = scalar_lea.hbm %s1354_s5, 1024 }
  0x25   : > { %p755_p3 = pneg %p1125_p2  ;;  %s206_s27 = sshll.u32 %s1023_s26, 4  ;;  %s1140_s27 = int_to_ptr.vmem [resolvable:$true] %s206_s27 }
  0x26   : > { %p861_p6 = scmp.ne.s32.totalorder %s1354_s5, %s860_s30  ;;  %p867_p13 = scmp.lt.u32.totalorder %s860_s30, %s1354_s5 }
  0x27   : > { %p1136_p5 = pnand %p755_p3, %p1358_p9 }
  0x29   : > { %p862_p7 = pneg %p1136_p5 }
  0x2b   : > { %p863_p8 = pnand %p862_p7, %p861_p6 }
  0x2d   : > { %p864_p11 = pneg %p863_p8 }
  0x2f   : > { %p869_p1 = pnand %p867_p13, %p864_p11 }
  0x31   : > { %872 = shalt.err (!%p869_p1)
}
  0x32   : > { %s873_s12 = scalar_lea.vmem %s1129_s24, 1024  ;;  %p881_p10 = scmp.lt.s32.totalorder %s1129_s24, %s1129_s24 }
  0x33   : > { %p874_p3 = scmp.ne.s32.totalorder %s1129_s24, %s873_s12  ;;  %p882_p6 = scmp.lt.s32.totalorder %s873_s12, %s873_s12 }
  0x35   : > { %p876_p4 = pnand %p874_p3, %p862_p7  ;;  %p883_p8 = por %p882_p6, %p881_p10 }
  0x37   : > { %p877_p9 = pneg %p876_p4 }
  0x39   : > { %p884_p0 = pnand %p883_p8, %p877_p9 }
  0x3b   : > { %887 = shalt.err (!%p884_p0)
}
  0x3c   : > { %s1024_s13 = smov 64   ;;  %s1025_s14 = smov 4  }
  0x3d   : > { %758 = dma.hbm_to_vmem [thread:$0]  (!%p1136_p5), %s1354_s5, 1024, %s1129_s24, [#allocation9], %s1024_s13, %s1024_s13, %s1025_s14  }
  0x3e   : > { %s888_s28 = scalar_lea.hbm %s1355_s6, 1024 }
  0x3f   : > { %p889_p10 = scmp.ne.s32.totalorder %s1355_s6, %s888_s28  ;;  %p895_p4 = scmp.lt.u32.totalorder %s888_s28, %s1355_s6 }
  0x41   : > { %p891_p9 = pnand %p889_p10, %p862_p7 }
  0x43   : > { %p892_p0 = pneg %p891_p9 }
  0x45   : > { %p897_p11 = pnand %p895_p4, %p892_p0 }
  0x47   : > { %900 = shalt.err (!%p897_p11)
}
  0x48   : > { %s901_s24 = scalar_lea.vmem %s1140_s27, 1024  ;;  %p909_p6 = scmp.lt.s32.totalorder %s1140_s27, %s1140_s27 }
  0x49   : > { %p902_p13 = scmp.ne.s32.totalorder %s1140_s27, %s901_s24  ;;  %p910_p8 = scmp.lt.s32.totalorder %s901_s24, %s901_s24 }
  0x4b   : > { %p904_p1 = pnand %p902_p13, %p862_p7  ;;  %p911_p10 = por %p910_p8, %p909_p6 }
  0x4d   : > { %p905_p3 = pneg %p904_p1 }
  0x4f   : > { %p912_p9 = pnand %p911_p10, %p905_p3 }
  0x51   : > { %915 = shalt.err (!%p912_p9)
}
  0x52   : > { %761 = dma.hbm_to_vmem [thread:$0]  (!%p1136_p5), %s1355_s6, 1024, %s1140_s27, [#allocation9], %s1024_s13, %s1024_s13, %s1025_s14  }
  0x53   : > { %s1195_s12 = sadd.s32 1, %s1018_s17   ;;  %s65_s25 = sadd.s32 1, %s1014_s16 }
  0x54   : > { %s62_s15 = ssub.s32 %s1018_s17, %s1195_s12  ;;  %p72_p7 = scmp.ne.s32.totalorder %s1014_s16, %s1010_s1 }
  0x55   : > { %p63_p0 = scmp.eq.s32.totalorder %s62_s15, 0  ;;  %p73_p4 = scmp.eq.s32.totalorder %s1018_s17, 0 }
  0x56   : > { %p1365_p11 = scmp.eq.s32.totalorder %s1106_s18, 1  ;;  %p772_p1 = scmp.lt.s32.totalorder %s1018_s17, 2 }
  0x57   : > { %s1211_s23 = scalar_select %p63_p0, %s1014_s16, %s65_s25  }
  0x58   : > { %p1205_p13 = por %p1365_p11, %p72_p7  ;;  %p74_p3 = por %p73_p4, %p72_p7 }
  0x59   : > { %s226_s26 = sand.u32 1, %s1014_s16   ;;  %s659_s27 = sshll.u32 %s1018_s17, 7 }
  0x5a   : > { %s1366_s19 = scalar_select %p1205_p13, 1, 0 }
  0x5b   : > { %s658_s28 = sshll.u32 %s226_s26, 3  ;;  %s1218_s29 = scalar_lea.hbm %s1352_s3, %s659_s27 }
  0x5c   : > { %s230_s30 = scalar_lea.vmem [#allocation5], %s658_s28  ;;  %p1222_p5 = pnand %p772_p1, %p74_p3 }
  0x5d   : > { %s237_s8 = sshll.u32 %s230_s30, 4  ;;  %s227_s24 = scalar_lea.sflag [#allocation6], %s226_s26  ;;  %s1220_s8 = int_to_ptr.vmem [resolvable:$true] %s237_s8 }
  0x5e   : > { %s916_s10 = scalar_lea.hbm %s1218_s29, 128  ;;  %p918_p8 = pneg %p1222_p5 }
  0x5f   : > { %p917_p6 = scmp.ne.s32.totalorder %s1218_s29, %s916_s10  ;;  %s921_s15 = scalar_lea.hbm %s1352_s3, 256 }
  0x60   : > { %p922_p7 = scmp.lt.u32.totalorder %s1218_s29, %s1352_s3  ;;  %p923_p0 = scmp.lt.u32.totalorder %s921_s15, %s916_s10 }
  0x61   : > { %p919_p10 = pnand %p918_p8, %p917_p6  ;;  %p925_p11 = scmp.lt.u32.totalorder %s916_s10, %s1218_s29 }
  0x62   : > { %p924_p4 = por %p923_p0, %p922_p7 }
  0x63   : > { %p920_p9 = pneg %p919_p10 }
  0x64   : > { %p926_p1 = por %p925_p11, %p924_p4 }
  0x66   : > { %p927_p3 = pnand %p926_p1, %p920_p9 }
  0x68   : > { %930 = shalt.err (!%p927_p3)
}
  0x69   : > { %s931_s26 = scalar_lea.vmem %s1220_s8, 128  ;;  %s1026_s13 = smov [#allocation5]  }
  0x6a   : > { %p932_p6 = scmp.ne.s32.totalorder %s1220_s8, %s931_s26  ;;  %s936_s14 = sshll.u32 %s1026_s13, 4  ;;  %s937_s14 = int_to_ptr.vmem [resolvable:$false] %s936_s14 }
  0x6b   : > { %s938_s30 = scalar_lea.vmem %s937_s14, 256  ;;  %p939_p12 = scmp.lt.s32.totalorder %s1220_s8, %s937_s14 }
  0x6c   : > { %p934_p10 = pnand %p932_p6, %p918_p8  ;;  %p940_p7 = scmp.lt.s32.totalorder %s938_s30, %s931_s26 }
  0x6e   : > { %p935_p13 = pneg %p934_p10  ;;  %p941_p0 = por %p940_p7, %p939_p12 }
  0x70   : > { %p942_p4 = pnand %p941_p0, %p935_p13 }
  0x72   : > { %945 = shalt.err (!%p942_p4)
}
  0x73   : > { %765 = dma.hbm_to_vmem [thread:$0]  (!%p1222_p5), %s1218_s29, 128, %s1220_s8, %s227_s24  }
  0x74   : > { %246 = sbr.rel (%p1125_p2) target bundleno = 417 (0x1a1), region = 40  ;;  %s1254_s10 = sand.u32 (!%p1125_p2), 1, %s1010_s1  }
  0x75   : > { %s661_s11 = sshll.u32 (!%p1125_p2), %s1254_s10, 3  ;;  %s249_s25 = scalar_lea.sflag (!%p1125_p2), [#allocation6], %s1254_s10 }
  0x76   : > { %s1258_s15 = scalar_lea.vmem (!%p1125_p2), [#allocation5], %s661_s11  ;;  %p1368_p12 = scmp.ne.s32.totalorder (!%p1125_p2), %s1361_s20, 0 }
  0x7b   : > { %993 = dma.done.wait (%p1368_p12), %s249_s25, 128  }
  0x7c   : > { %995 = vsyncadd (%p1368_p12), %s249_s25, 4294967168  ;;  %p1369_p13 = scmp.eq.s32.totalorder %s1106_s18, 0 }
  0x7e   : > { %997 = dma.done.wait (%p1369_p13), [#allocation9], 2048   ;;  %p1370_p2 = pmov %p1369_p13 }
  0x7f   : > { %v406_v0 = vlaneseq  ;;  %v1027_v1 = vmov 0.0   ;;  %s408_s22 = sld [smem:[#allocation4 + %s1106_s18]]  ;;  %vm1028_vm0 = vmmov 0   ;;  %v816_v3 = vld [vmem:[#allocation8] sm:$0xff]   ;;  %v817_v5 = vld [vmem:[#allocation8 + $0x8] sm:$0xff]   ;;  %v818_v9 = vld [vmem:[#allocation8 + $0x10] sm:$0xff]  }
  0x80   : > { %999 = vsyncadd (%p1370_p2), [#allocation9], 4294965248  ;;  %703 = vmatprep.subr.bf16.mxu0 %v1027_v1  ;;  %723 = vmatprep.subr.bf16.mxu1 %v1027_v1  ;;  %v823_v10 = vld [vmem:[#allocation10] sm:$0xff]   ;;  %v825_v12 = vld [vmem:[#allocation10 + $0x8] sm:$0xff]   ;;  %s1279_s20 = sld [smem:[#allocation3 + %s1106_s18]]  ;;  %p289_p5 = scmp.lt.s32.totalorder %s1106_s18, 1 }
  0x81   : > { %719 = vmatprep.mubr.msk.bf16.mxu0 %vm1028_vm0, %v1027_v1  ;;  %739 = vmatprep.mubr.msk.bf16.mxu1 %vm1028_vm0, %v1027_v1  ;;  %v407_v2 = vshrl.u32 %v406_v0, 7  ;;  %v819_v14 = vld [vmem:[#allocation8 + $0x18] sm:$0xff]   ;;  %v826_v16 = vld [vmem:[#allocation10 + $0x10] sm:$0xff]   ;;  %v820_v18 = vld [vmem:[#allocation8 + $0x20] sm:$0xff]   ;;  %s682_s14 = sshll.u32 %s1106_s18, 4  ;;  %s288_s30 = scalar_lea.vmem [#allocation11], %s1254_s10 }
  0x82   : > { %704 = vmatpush3.bf16.msra.mxu0 %v816_v3  ;;  %724 = vmatpush3.bf16.msra.mxu1 %v823_v10  ;;  %v413_v20 = vld [vmem:[%s1258_s15] sm:$0xff]  ;;  %v821_v23 = vld [vmem:[#allocation8 + $0x28] sm:$0xff]   ;;  %s290_s29 = scalar_select %p289_p5, %s1106_s18, 1  ;;  %v828_v25 = vld [vmem:[#allocation10 + $0x20] sm:$0xff]  }
  0x83   : > { %705 = vmatprep.subr.bf16.mxu0 %v1027_v1  ;;  %725 = vmatprep.subr.bf16.mxu1 %v1027_v1  ;;  %v827_v21 = vld [vmem:[#allocation10 + $0x18] sm:$0xff]   ;;  %v822_v27 = vld [vmem:[#allocation8 + $0x30] sm:$0xff]   ;;  %v829_v29 = vld [vmem:[#allocation10 + $0x28] sm:$0xff]   ;;  %s559_s11 = sshll.u32 %s288_s30, 4  ;;  %p1371_p11 = scmp.ne.s32.totalorder %s1366_s19, 0  ;;  %s1308_s11 = int_to_ptr.vmem [resolvable:$true] %s559_s11 }
  0x84   : > { %s291_s24 = scalar_lea.vmem %s1351_s2, %s290_s29  ;;  %v824_v31 = vld [vmem:[#allocation8 + $0x38] sm:$0xff]   ;;  %v830_v36 = vld [vmem:[#allocation10 + $0x30] sm:$0xff]   ;;  %v434_v38 = vld [vmem:[%s1353_s4] sm:$0x1]  ;;  %s946_s29 = scalar_lea.vmem %s1308_s11, 16 }
  0x85   : > { %v409_v4 = vstv %s408_s22  ;;  %v293_v32 = vld [vmem:[%s291_s24] sm:$0x1]  ;;  %v831_v41 = vld [vmem:[#allocation10 + $0x38] sm:$0xff]   ;;  %s1306_s22 = scalar_lea.hbm %s1356_s7, %s682_s14  ;;  %p947_p9 = scmp.ne.s32.totalorder %s1308_s11, %s946_s29 }
  0x86   : > { %vm410_vm1 = vcmp.lt.s32.totalorder %v407_v2, %v409_v4  ;;  %706 = vmatpush3.bf16.msra.mxu0 %v817_v5  ;;  %726 = vmatpush3.bf16.msra.mxu1 %v825_v12  ;;  %p431_p8 = scmp.ne.s32.totalorder %s1279_s20, 0  ;;  %v294_v35 = vpack.c.bf16 %v293_v32, %v293_v32  ;;  %s547_s20 = scalar_lea.sflag [#allocation7], %s1254_s10 }
  0x87   : > { %v673_v6 = vsel %vm410_vm1, 1.0, %v1027_v1  ;;  %707 = vmatprep.subr.bf16.mxu0 %v1027_v1  ;;  %727 = vmatprep.subr.bf16.mxu1 %v1027_v1  ;;  %p948_p1 = pnand %p947_p9, %p1371_p11  ;;  %s1029_s18 = smov [#allocation11]  }
  0x88   : > { %v421_v7 = vrot.slane %v673_v6, 4  ;;  %v414_v22 = vmul.f32 %v673_v6, %v413_v20  ;;  %s432_s28 = scalar_select %p431_p8, 1, 0 }
  0x89   : > { %p949_p3 = pneg %p948_p1  ;;  %s950_s8 = sshll.u32 %s1029_s18, 4  ;;  %s951_s8 = int_to_ptr.vmem [resolvable:$false] %s950_s8 }
  0x8a   : > { %v422_v8 = vadd.f32 %v673_v6, %v421_v7  ;;  %708 = vmatpush3.bf16.msra.mxu0 %v818_v9  ;;  %728 = vmatpush3.bf16.msra.mxu1 %v826_v16  ;;  %v415_v24 = vrot.slane %v414_v22, 4  ;;  %s433_s27 = scvt.s32.f32 %s432_s28  ;;  %s952_s9 = scalar_lea.vmem %s951_s8, 32 }
  0x8b   : > { %709 = vmatprep.subr.bf16.mxu0 %v1027_v1  ;;  %729 = vmatprep.subr.bf16.mxu1 %v1027_v1  ;;  %p953_p6 = scmp.lt.s32.totalorder %s1308_s11, %s951_s8  ;;  %p954_p10 = scmp.lt.s32.totalorder %s952_s9, %s946_s29 }
  0x8c   : > { %v423_v11 = vrot.slane %v422_v8, 2  ;;  %v416_v26 = vadd.f32 %v415_v24, %v414_v22  ;;  %v436_v40 = vstv %s433_s27 }
  0x8d   : > { %p955_p7 = por %p954_p10, %p953_p6 }
  0x8e   : > { %v424_v13 = vadd.f32 %v423_v11, %v422_v8  ;;  %710 = vmatpush3.bf16.msra.mxu0 %v819_v14  ;;  %730 = vmatpush3.bf16.msra.mxu1 %v827_v21  ;;  %v417_v28 = vrot.slane %v416_v26, 2 }
  0x8f   : > { %711 = vmatprep.subr.bf16.mxu0 %v1027_v1  ;;  %731 = vmatprep.subr.bf16.mxu1 %v1027_v1  ;;  %p956_p0 = pnand %p955_p7, %p949_p3 }
  0x90   : > { %v425_v15 = vrot.slane %v424_v13, 1  ;;  %v418_v30 = vadd.f32 %v417_v28, %v416_v26 }
  0x92   : > { %v426_v17 = vadd.f32 %v425_v15, %v424_v13  ;;  %712 = vmatpush3.bf16.msra.mxu0 %v820_v18  ;;  %732 = vmatpush3.bf16.msra.mxu1 %v828_v25  ;;  %v419_v33 = vrot.slane %v418_v30, 1 }
  0x93   : > { %713 = vmatprep.subr.bf16.mxu0 %v1027_v1  ;;  %733 = vmatprep.subr.bf16.mxu1 %v1027_v1 }
  0x94   : > { %v427_v19 = vmax.f32 %v426_v17, 1.0  ;;  %v420_v37 = vadd.f32 %v419_v33, %v418_v30 }
  0x96   : > { %832 = vrcp.f32 %v427_v19  ;;  %714 = vmatpush3.bf16.msra.mxu0 %v821_v23  ;;  %734 = vmatpush3.bf16.msra.mxu1 %v829_v29 }
  0x97   : > { %715 = vmatprep.subr.bf16.mxu0 %v1027_v1  ;;  %735 = vmatprep.subr.bf16.mxu1 %v1027_v1 }
  0x9a   : > { %716 = vmatpush3.bf16.msra.mxu0 %v822_v27  ;;  %736 = vmatpush3.bf16.msra.mxu1 %v830_v36 }
  0x9b   : > { %717 = vmatprep.subr.bf16.mxu0 %v1027_v1  ;;  %737 = vmatprep.subr.bf16.mxu1 %v1027_v1 }
  0x9e   : > { %718 = vmatpush3.bf16.msra.mxu0 %v824_v31  ;;  %738 = vmatpush3.bf16.msra.mxu1 %v831_v41 }
  0xa0   : > { %v833_v34 = vpop.eup %832 }
  0xa1   : > { %v429_v39 = vmul.f32 %v833_v34, %v420_v37  ;;  %720 = vmatmul.mubr.bf16.vlgmr.msra.gmra.mrb[0].mxu0 %v294_v35 }
  0xa3   : > { %v435_v42 = vsub.f32 %v434_v38, %v429_v39 }
  0xa5   : > { %v437_v43 = vmul.f32 %v436_v40, %v435_v42 }
  0xa7   : > { %v438_v44 = vadd.f32 %v437_v43, %v429_v39 }
  0xa9   : > { %v439_v45 = vpack.c.bf16 %v438_v44, %v438_v44 }
  0xab   : > { %740 = vmatmul.mubr.bf16.vlgmr.msra.gmra.mrb[0].mxu1 %v439_v45 }
 0x174   : > { %v393_v46 = vpop.f32.mrb[0].mxu0 }
 0x175   : > { %v672_v47 = vmul.f32 -1.442695, %v393_v46  ;;  %v721_v48 = vpop.f32.mrb[1].mxu0 }
 0x176   : > { %v396_v49 = vpop.f32.mrb[2].mxu0 }
 0x177   : > { %834 = vpow2.f32 %v672_v47  ;;  %v722_v50 = vpop.f32.mrb[3].mxu0 }
 0x17e   : > { %v538_v51 = vpop.f32.mrb[0].mxu1 }
 0x17f   : > { %v741_v52 = vpop.f32.mrb[1].mxu1 }
 0x180   : > { %v541_v53 = vpop.f32.mrb[2].mxu1 }
 0x181   : > { %v742_v54 = vpop.f32.mrb[3].mxu1  ;;  %v835_v55 = vpop.eup %834 }
 0x182   : > { %v402_v56 = vadd.f32 1.0, %v835_v55 }
 0x184   : > { %836 = vrcp.f32 %v402_v56 }
 0x18e   : > { %v837_v57 = vpop.eup %836 }
 0x18f   : > { %v405_v58 = vmul.f32 %v837_v57, %v393_v46 }
 0x191   : > { %v544_v59 = vadd.f32 %v538_v51, %v405_v58 }
 0x193   : > { %545 = vst [vmem:[%s288_s30] sm:$0x1] %v544_v59 }
 0x194   : > { %959 = shalt.err (!%p956_p0)
}
 0x195   : > { %s960_s10 = scalar_lea.hbm %s1306_s22, 16  ;;  %s964_s27 = scalar_lea.hbm %s1356_s7, 32 }
 0x196   : > { %p961_p4 = scmp.ne.s32.totalorder %s1306_s22, %s960_s10  ;;  %p965_p2 = scmp.lt.u32.totalorder %s1306_s22, %s1356_s7 }
 0x197   : > { %p966_p5 = scmp.lt.u32.totalorder %s964_s27, %s960_s10  ;;  %p968_p9 = scmp.lt.u32.totalorder %s960_s10, %s1306_s22 }
 0x198   : > { %p962_p12 = pnand %p961_p4, %p1371_p11 }
 0x199   : > { %p967_p8 = por %p966_p5, %p965_p2 }
 0x19a   : > { %p963_p13 = pneg %p962_p12 }
 0x19b   : > { %p969_p1 = por %p968_p9, %p967_p8 }
 0x19d   : > { %p970_p3 = pnand %p969_p1, %p963_p13 }
 0x19f   : > { %973 = shalt.err (!%p970_p3)
}
 0x1a0   : > { %753 = dma.vmem_to_hbm [thread:$0]  (%p1371_p11), %s1308_s11, 16, %s1306_s22, %s547_s20  }
 0x1a1 PF: > { %s571_s14 = sand.u32 1, %s1006_s0   ;;  %p1372_p6 = scmp.ne.s32.totalorder %s1362_s21, 0 }
 0x1a2   : > { %p1373_p10 = scmp.ge.s32.totalorder %s1018_s17, 2  ;;  %s572_s30 = scalar_lea.sflag [#allocation7], %s571_s14 }
 0x1a4   : > { %p767_p7 = pnand %p1373_p10, %p1372_p6 }
 0x1a6   : > { %1001 = dma.done.wait (!%p767_p7), %s572_s30, 16  }
 0x1a7   : > { %1003 = vsyncadd (!%p767_p7), %s572_s30, 4294967280  ;;  %p29_p0 = scmp.ge.s32.totalorder %s1195_s12, 4   ;;  %s1374_s0 = smov %s1010_s1 }
 0x1a8   : > { %s1375_s1 = smov %s1014_s16  ;;  %s1376_s16 = smov %s1211_s23 }
 0x1a9   : > { %s1377_s17 = smov %s1195_s12  ;;  %31 = sbr.rel (!%p29_p0) target bundleno = 28 (0x1c), region = 96 }
 0x1b0   :  { %576 = vsyncpa [#allocation6], 1 }
 0x1b1   :  { %578 = vsyncpa [#allocation6 + $0x1], 1 }
 0x1b2   :  { %579 = vsyncpa [#allocation9], 1 }
 0x1b3   :  { %580 = vsyncpa [#allocation7], 1 }
 0x1b4   :  { %582 = vsyncpa [#allocation7 + $0x1], 1 }

</bundles_post_ra>
